<compile_context>
chip_gen: v6e
topology: v6e:2x2x1
jax: 0.10.0
libtpu: 0.0.40
codegen_flags: <defaults>
</compile_context>

<pallas_src>
import functools
import math

import jax
import jax.numpy as jnp
from jax.experimental import pallas as pl
from jax.experimental.pallas import tpu as pltpu

WINDOW_SIZE = 7


def _lncc_kernel(x_ref, y_ref, out_ref, *, window, img_h, img_w):
    pad = window // 2
    x = x_ref[...].astype(jnp.float32)          # (rows, lanes) = (tb*H, pack_w*W)
    y = y_ref[...].astype(jnp.float32)
    rows, lanes = x.shape
    inv_n = 1.0 / float(window * window)

    # ---- narrow boundary masks, hoisted once per block -------------------
    lane_pos = jax.lax.broadcasted_iota(jnp.int32, (1, lanes), 1)
    if img_w & (img_w - 1) == 0:
        ci = jnp.bitwise_and(lane_pos, img_w - 1)      # lane index within image
    else:
        ci = lane_pos % img_w
    row_pos = jax.lax.broadcasted_iota(jnp.int32, (rows, 1), 0)
    if img_h & (img_h - 1) == 0:
        ri = jnp.bitwise_and(row_pos, img_h - 1)       # row index within image
    else:
        ri = row_pos % img_h

    lane_fwd = [(ci < img_w - d).astype(jnp.float32) for d in range(1, pad + 1)]
    lane_bwd = [(ci >= d).astype(jnp.float32) for d in range(1, pad + 1)]
    row_fwd = [(ri < img_h - d).astype(jnp.float32) for d in range(1, pad + 1)]
    row_bwd = [(ri >= d).astype(jnp.float32) for d in range(1, pad + 1)]

    def box_sum(v):
        # zero-padded (2*pad+1)-tap box sum, separable: lanes (W) then rows (H).
        acc = v
        for d in range(1, pad + 1):
            acc = acc + pltpu.roll(v, lanes - d, axis=1) * lane_fwd[d - 1]
            acc = acc + pltpu.roll(v, d, axis=1) * lane_bwd[d - 1]
        w = acc
        acc = w
        for d in range(1, pad + 1):
            acc = acc + pltpu.roll(w, rows - d, axis=0) * row_fwd[d - 1]
            acc = acc + pltpu.roll(w, d, axis=0) * row_bwd[d - 1]
        return acc

    # Per-quantity sweeps (no concatenate / slab slices); tail fused as we go.
    x_sum = box_sum(x)
    y_sum = box_sum(y)
    xy_sum = box_sum(x * y)
    cov = xy_sum - x_sum * y_sum * inv_n
    xsq_sum = box_sum(x * x)
    x_var = xsq_sum - x_sum * x_sum * inv_n
    ysq_sum = box_sum(y * y)
    y_var = ysq_sum - y_sum * y_sum * inv_n

    # exact division (avoids approx-reciprocal drift flagged in review)
    lncc = (cov * cov) / (x_var * y_var + 1e-5)

    # Sublane-only, tile-aligned partial reduction (pure VPU adds, no
    # cross-lane XLU reduce); the host sums the whole partials array.
    out_ref[...] = jnp.sum(lncc.reshape(rows // 8, 8, lanes), axis=0)


def _num_tensorcores():
    # Best-effort generation sniff: v7x is the only generation with 2 TCs.
    try:
        kind = (getattr(jax.devices()[0], "device_kind", "") or "").lower()
        if "v7" in kind or "7x" in kind:
            return 2
    except Exception:
        pass
    return 1


def _plan(batch, img_h, img_w):
    """Pick lane packing (images per lane group) and super-images per block."""
    # -- lane packing: make the lane width a multiple of 128 when it pays ---
    pack_w = 128 // math.gcd(img_w, 128)
    if pack_w > 1:
        packed_cost = -(-batch // pack_w) * pack_w * img_w       # swept elems
        unpacked_cost = batch * (-(-img_w // 128)) * 128         # vreg-padded
        if packed_cost >= unpacked_cost:
            pack_w = 1
    lanes = pack_w * img_w

    # -- sublane granularity: smallest #images per block with rows % 8 == 0 --
    g = 8 // math.gcd(img_h, 8)

    # -- tile size: ~24 live f32 (rows, lanes) slabs, <= ~20 MiB live set ----
    slab_budget = (20 * 1024 * 1024) // 24
    rows_cap = max(g * img_h, slab_budget // (lanes * 4))
    tb_cap = max(g, (rows_cap // img_h) // g * g)

    b_super = -(-batch // pack_w)                  # real super-images
    nblk = max(1, -(-b_super // tb_cap))
    if _num_tensorcores() >= 2:
        # v7x: keep an even number of 'parallel' blocks so both TCs stay busy.
        if nblk == 1 and b_super >= 2 * g:
            nblk = 2
        elif nblk > 1 and nblk % 2 == 1:
            nblk += 1
    tb = -(-b_super // nblk)
    tb = -(-tb // g) * g                           # round up to granularity g
    b_super_pad = nblk * tb
    return pack_w, lanes, tb, nblk, b_super_pad


def lncc_loss_pallas(x, y, window_size=WINDOW_SIZE):
    """x, y: (N, 1, H, W) arrays (NCHW).  Returns the scalar LNCC loss."""
    N, C, H, W = x.shape
    assert C == 1, "LNCC sum-filter conv requires a single channel"
    B = N * C

    pack_w, lanes, tb, nblk, b_super_pad = _plan(B, H, W)
    b_pad = b_super_pad * pack_w

    def pack(a):
        a = a.reshape(B, H, W)
        if b_pad > B:
            a = jnp.concatenate(
                [a, jnp.zeros((b_pad - B, H, W), a.dtype)], axis=0)
        # (b_pad, H, W) -> (b_super, pack_w, H, W) -> (b_super, H, pack_w, W)
        a = a.reshape(b_super_pad, pack_w, H, W).transpose(0, 2, 1, 3)
        return a.reshape(b_super_pad * H, lanes)

    xb = pack(x)
    yb = pack(y)

    kernel = functools.partial(_lncc_kernel, window=window_size,
                               img_h=H, img_w=W)

    partials = pl.pallas_call(
        kernel,
        out_shape=jax.ShapeDtypeStruct((nblk * 8, lanes), jnp.float32),
        grid_spec=pltpu.PrefetchScalarGridSpec(
            num_scalar_prefetch=0,
            grid=(nblk,),
            in_specs=[
                pl.BlockSpec((tb * H, lanes), lambda b: (b, 0)),   # x block
                pl.BlockSpec((tb * H, lanes), lambda b: (b, 0)),   # y block
            ],
            out_specs=pl.BlockSpec((8, lanes), lambda b: (b, 0)),  # partials
        ),
        compiler_params=pltpu.CompilerParams(
            dimension_semantics=("parallel",),
            vmem_limit_bytes=40 * 1024 * 1024),
    )(xb, yb)

    # Zero-padded images contribute exactly 0, so a flat sum over the whole
    # partials array is exact; divide by the real element count.
    total = jnp.sum(partials)
    return -(total / float(B * H * W))


def lncc_loss_ref(x, y, window_size=WINDOW_SIZE):
    """Pure-JAX reference mirroring the PyTorch module (conv2d with ones)."""
    x = x.astype(jnp.float32)
    y = y.astype(jnp.float32)
    k = window_size
    pad = k // 2
    w = jnp.ones((1, 1, k, k), jnp.float32)

    def conv(a):
        return jax.lax.conv_general_dilated(
            a, w, window_strides=(1, 1), padding=[(pad, pad), (pad, pad)],
            dimension_numbers=("NCHW", "OIHW", "NCHW"),
            precision=jax.lax.Precision.HIGHEST)

    x_sum = conv(x)
    y_sum = conv(y)
    xsq_sum = conv(x * x)
    ysq_sum = conv(y * y)
    xy_sum = conv(x * y)

    npts = float(k * k)
    x_mu = x_sum / npts
    y_mu = y_sum / npts
    cov = xy_sum - y_mu * x_sum - x_mu * y_sum + x_mu * y_mu * npts
    x_var = xsq_sum - 2.0 * x_mu * x_sum + x_mu * x_mu * npts
    y_var = ysq_sum - 2.0 * y_mu * y_sum + y_mu * y_mu * npts
    lncc = cov * cov / (x_var * y_var + 1e-5)
    return -jnp.mean(lncc)


if __name__ == "__main__":
    key = jax.random.PRNGKey(0)
    kx, ky = jax.random.split(key)
    N, C, H, W = 4, 1, 16, 16          # C must be 1 (sum filter is (1,1,7,7))
    x = jax.random.normal(kx, (N, C, H, W), dtype=jnp.float32)
    y = jax.random.normal(ky, (N, C, H, W), dtype=jnp.float32)

    loss = jax.block_until_ready(lncc_loss_pallas(x, y))
    ref = jax.block_until_ready(lncc_loss_ref(x, y))

    assert jnp.isfinite(loss), "non-finite loss"
    assert jnp.allclose(loss, ref, rtol=1e-3, atol=1e-5), (loss, ref)
    print("KERNEL_OK")
</pallas_src>

<mosaic_0001>
module attributes {stable_mosaic.version = 11 : i64} {
  func.func @_lncc_kernel(%arg0: i32, %arg1: memref<16x128xf32, #tpu.memory_space<vmem>>, %arg2: memref<16x128xf32, #tpu.memory_space<vmem>>, %arg3: memref<8x128xf32, #tpu.memory_space<vmem>>) attributes {dimension_semantics = [#tpu.dimension_semantics<parallel>], iteration_bounds = array<i64: 1>, scalar_prefetch = 0 : i64, scratch_operands = 0 : i64, tpu.core_type = #tpu.core_type<tc>, window_params = [{transform_indices = @transform_0, window_bounds = array<i64: 16, 128>}, {transform_indices = @transform_1, window_bounds = array<i64: 16, 128>}, {transform_indices = @transform_2, window_bounds = array<i64: 8, 128>}]} {
    %c0 = arith.constant 0 : index
    %c0_0 = arith.constant 0 : index
    %0 = vector.load %arg1[%c0, %c0_0] : memref<16x128xf32, #tpu.memory_space<vmem>>, vector<16x128xf32>
    %c0_1 = arith.constant 0 : index
    %c0_2 = arith.constant 0 : index
    %1 = vector.load %arg2[%c0_1, %c0_2] : memref<16x128xf32, #tpu.memory_space<vmem>>, vector<16x128xf32>
    %2 = tpu.iota {dimensions = array<i32: 1>} : vector<1x128xi32>
    %c15_i32 = arith.constant 15 : i32
    %3 = vector.broadcast %c15_i32 : i32 to vector<1x128xi32>
    %4 = arith.andi %2, %3 : vector<1x128xi32>
    %5 = tpu.iota {dimensions = array<i32: 0>} : vector<16x1xi32>
    %c15_i32_3 = arith.constant 15 : i32
    %6 = vector.broadcast %c15_i32_3 : i32 to vector<16x1xi32>
    %7 = arith.andi %5, %6 : vector<16x1xi32>
    %c15_i32_4 = arith.constant 15 : i32
    %8 = vector.broadcast %c15_i32_4 : i32 to vector<1x128xi32>
    %9 = arith.cmpi slt, %4, %8 : vector<1x128xi32>
    %10 = arith.extui %9 : vector<1x128xi1> to vector<1x128xi32>
    %11 = arith.sitofp %10 : vector<1x128xi32> to vector<1x128xf32>
    %c14_i32 = arith.constant 14 : i32
    %12 = vector.broadcast %c14_i32 : i32 to vector<1x128xi32>
    %13 = arith.cmpi slt, %4, %12 : vector<1x128xi32>
    %14 = arith.extui %13 : vector<1x128xi1> to vector<1x128xi32>
    %15 = arith.sitofp %14 : vector<1x128xi32> to vector<1x128xf32>
    %c13_i32 = arith.constant 13 : i32
    %16 = vector.broadcast %c13_i32 : i32 to vector<1x128xi32>
    %17 = arith.cmpi slt, %4, %16 : vector<1x128xi32>
    %18 = arith.extui %17 : vector<1x128xi1> to vector<1x128xi32>
    %19 = arith.sitofp %18 : vector<1x128xi32> to vector<1x128xf32>
    %c1_i32 = arith.constant 1 : i32
    %20 = vector.broadcast %c1_i32 : i32 to vector<1x128xi32>
    %21 = arith.cmpi sge, %4, %20 : vector<1x128xi32>
    %22 = arith.extui %21 : vector<1x128xi1> to vector<1x128xi32>
    %23 = arith.sitofp %22 : vector<1x128xi32> to vector<1x128xf32>
    %c2_i32 = arith.constant 2 : i32
    %24 = vector.broadcast %c2_i32 : i32 to vector<1x128xi32>
    %25 = arith.cmpi sge, %4, %24 : vector<1x128xi32>
    %26 = arith.extui %25 : vector<1x128xi1> to vector<1x128xi32>
    %27 = arith.sitofp %26 : vector<1x128xi32> to vector<1x128xf32>
    %c3_i32 = arith.constant 3 : i32
    %28 = vector.broadcast %c3_i32 : i32 to vector<1x128xi32>
    %29 = arith.cmpi sge, %4, %28 : vector<1x128xi32>
    %30 = arith.extui %29 : vector<1x128xi1> to vector<1x128xi32>
    %31 = arith.sitofp %30 : vector<1x128xi32> to vector<1x128xf32>
    %c15_i32_5 = arith.constant 15 : i32
    %32 = vector.broadcast %c15_i32_5 : i32 to vector<16x1xi32>
    %33 = arith.cmpi slt, %7, %32 : vector<16x1xi32>
    %34 = arith.extui %33 : vector<16x1xi1> to vector<16x1xi32>
    %35 = arith.sitofp %34 : vector<16x1xi32> to vector<16x1xf32>
    %c14_i32_6 = arith.constant 14 : i32
    %36 = vector.broadcast %c14_i32_6 : i32 to vector<16x1xi32>
    %37 = arith.cmpi slt, %7, %36 : vector<16x1xi32>
    %38 = arith.extui %37 : vector<16x1xi1> to vector<16x1xi32>
    %39 = arith.sitofp %38 : vector<16x1xi32> to vector<16x1xf32>
    %c13_i32_7 = arith.constant 13 : i32
    %40 = vector.broadcast %c13_i32_7 : i32 to vector<16x1xi32>
    %41 = arith.cmpi slt, %7, %40 : vector<16x1xi32>
    %42 = arith.extui %41 : vector<16x1xi1> to vector<16x1xi32>
    %43 = arith.sitofp %42 : vector<16x1xi32> to vector<16x1xf32>
    %c1_i32_8 = arith.constant 1 : i32
    %44 = vector.broadcast %c1_i32_8 : i32 to vector<16x1xi32>
    %45 = arith.cmpi sge, %7, %44 : vector<16x1xi32>
    %46 = arith.extui %45 : vector<16x1xi1> to vector<16x1xi32>
    %47 = arith.sitofp %46 : vector<16x1xi32> to vector<16x1xf32>
    %c2_i32_9 = arith.constant 2 : i32
    %48 = vector.broadcast %c2_i32_9 : i32 to vector<16x1xi32>
    %49 = arith.cmpi sge, %7, %48 : vector<16x1xi32>
    %50 = arith.extui %49 : vector<16x1xi1> to vector<16x1xi32>
    %51 = arith.sitofp %50 : vector<16x1xi32> to vector<16x1xf32>
    %c3_i32_10 = arith.constant 3 : i32
    %52 = vector.broadcast %c3_i32_10 : i32 to vector<16x1xi32>
    %53 = arith.cmpi sge, %7, %52 : vector<16x1xi32>
    %54 = arith.extui %53 : vector<16x1xi1> to vector<16x1xi32>
    %55 = arith.sitofp %54 : vector<16x1xi32> to vector<16x1xf32>
    %c127_i32 = arith.constant 127 : i32
    %56 = tpu.dynamic_rotate %0 by %c127_i32 dim 1 : vector<16x128xf32>, i32 -> vector<16x128xf32>
    %57 = vector.broadcast %11 : vector<1x128xf32> to vector<16x128xf32>
    %58 = arith.mulf %56, %57 : vector<16x128xf32>
    %59 = arith.addf %0, %58 : vector<16x128xf32>
    %c1_i32_11 = arith.constant 1 : i32
    %60 = tpu.dynamic_rotate %0 by %c1_i32_11 dim 1 : vector<16x128xf32>, i32 -> vector<16x128xf32>
    %61 = vector.broadcast %23 : vector<1x128xf32> to vector<16x128xf32>
    %62 = arith.mulf %60, %61 : vector<16x128xf32>
    %63 = arith.addf %59, %62 : vector<16x128xf32>
    %c126_i32 = arith.constant 126 : i32
    %64 = tpu.dynamic_rotate %0 by %c126_i32 dim 1 : vector<16x128xf32>, i32 -> vector<16x128xf32>
    %65 = vector.broadcast %15 : vector<1x128xf32> to vector<16x128xf32>
    %66 = arith.mulf %64, %65 : vector<16x128xf32>
    %67 = arith.addf %63, %66 : vector<16x128xf32>
    %c2_i32_12 = arith.constant 2 : i32
    %68 = tpu.dynamic_rotate %0 by %c2_i32_12 dim 1 : vector<16x128xf32>, i32 -> vector<16x128xf32>
    %69 = vector.broadcast %27 : vector<1x128xf32> to vector<16x128xf32>
    %70 = arith.mulf %68, %69 : vector<16x128xf32>
    %71 = arith.addf %67, %70 : vector<16x128xf32>
    %c125_i32 = arith.constant 125 : i32
    %72 = tpu.dynamic_rotate %0 by %c125_i32 dim 1 : vector<16x128xf32>, i32 -> vector<16x128xf32>
    %73 = vector.broadcast %19 : vector<1x128xf32> to vector<16x128xf32>
    %74 = arith.mulf %72, %73 : vector<16x128xf32>
    %75 = arith.addf %71, %74 : vector<16x128xf32>
    %c3_i32_13 = arith.constant 3 : i32
    %76 = tpu.dynamic_rotate %0 by %c3_i32_13 dim 1 : vector<16x128xf32>, i32 -> vector<16x128xf32>
    %77 = vector.broadcast %31 : vector<1x128xf32> to vector<16x128xf32>
    %78 = arith.mulf %76, %77 : vector<16x128xf32>
    %79 = arith.addf %75, %78 : vector<16x128xf32>
    %c15_i32_14 = arith.constant 15 : i32
    %80 = tpu.dynamic_rotate %79 by %c15_i32_14 dim 0 : vector<16x128xf32>, i32 -> vector<16x128xf32>
    %81 = vector.broadcast %35 : vector<16x1xf32> to vector<16x128xf32>
    %82 = arith.mulf %80, %81 : vector<16x128xf32>
    %83 = arith.addf %79, %82 : vector<16x128xf32>
    %c1_i32_15 = arith.constant 1 : i32
    %84 = tpu.dynamic_rotate %79 by %c1_i32_15 dim 0 : vector<16x128xf32>, i32 -> vector<16x128xf32>
    %85 = vector.broadcast %47 : vector<16x1xf32> to vector<16x128xf32>
    %86 = arith.mulf %84, %85 : vector<16x128xf32>
    %87 = arith.addf %83, %86 : vector<16x128xf32>
    %c14_i32_16 = arith.constant 14 : i32
    %88 = tpu.dynamic_rotate %79 by %c14_i32_16 dim 0 : vector<16x128xf32>, i32 -> vector<16x128xf32>
    %89 = vector.broadcast %39 : vector<16x1xf32> to vector<16x128xf32>
    %90 = arith.mulf %88, %89 : vector<16x128xf32>
    %91 = arith.addf %87, %90 : vector<16x128xf32>
    %c2_i32_17 = arith.constant 2 : i32
    %92 = tpu.dynamic_rotate %79 by %c2_i32_17 dim 0 : vector<16x128xf32>, i32 -> vector<16x128xf32>
    %93 = vector.broadcast %51 : vector<16x1xf32> to vector<16x128xf32>
    %94 = arith.mulf %92, %93 : vector<16x128xf32>
    %95 = arith.addf %91, %94 : vector<16x128xf32>
    %c13_i32_18 = arith.constant 13 : i32
    %96 = tpu.dynamic_rotate %79 by %c13_i32_18 dim 0 : vector<16x128xf32>, i32 -> vector<16x128xf32>
    %97 = vector.broadcast %43 : vector<16x1xf32> to vector<16x128xf32>
    %98 = arith.mulf %96, %97 : vector<16x128xf32>
    %99 = arith.addf %95, %98 : vector<16x128xf32>
    %c3_i32_19 = arith.constant 3 : i32
    %100 = tpu.dynamic_rotate %79 by %c3_i32_19 dim 0 : vector<16x128xf32>, i32 -> vector<16x128xf32>
    %101 = vector.broadcast %55 : vector<16x1xf32> to vector<16x128xf32>
    %102 = arith.mulf %100, %101 : vector<16x128xf32>
    %103 = arith.addf %99, %102 : vector<16x128xf32>
    %c127_i32_20 = arith.constant 127 : i32
    %104 = tpu.dynamic_rotate %1 by %c127_i32_20 dim 1 : vector<16x128xf32>, i32 -> vector<16x128xf32>
    %105 = vector.broadcast %11 : vector<1x128xf32> to vector<16x128xf32>
    %106 = arith.mulf %104, %105 : vector<16x128xf32>
    %107 = arith.addf %1, %106 : vector<16x128xf32>
    %c1_i32_21 = arith.constant 1 : i32
    %108 = tpu.dynamic_rotate %1 by %c1_i32_21 dim 1 : vector<16x128xf32>, i32 -> vector<16x128xf32>
    %109 = vector.broadcast %23 : vector<1x128xf32> to vector<16x128xf32>
    %110 = arith.mulf %108, %109 : vector<16x128xf32>
    %111 = arith.addf %107, %110 : vector<16x128xf32>
    %c126_i32_22 = arith.constant 126 : i32
    %112 = tpu.dynamic_rotate %1 by %c126_i32_22 dim 1 : vector<16x128xf32>, i32 -> vector<16x128xf32>
    %113 = vector.broadcast %15 : vector<1x128xf32> to vector<16x128xf32>
    %114 = arith.mulf %112, %113 : vector<16x128xf32>
    %115 = arith.addf %111, %114 : vector<16x128xf32>
    %c2_i32_23 = arith.constant 2 : i32
    %116 = tpu.dynamic_rotate %1 by %c2_i32_23 dim 1 : vector<16x128xf32>, i32 -> vector<16x128xf32>
    %117 = vector.broadcast %27 : vector<1x128xf32> to vector<16x128xf32>
    %118 = arith.mulf %116, %117 : vector<16x128xf32>
    %119 = arith.addf %115, %118 : vector<16x128xf32>
    %c125_i32_24 = arith.constant 125 : i32
    %120 = tpu.dynamic_rotate %1 by %c125_i32_24 dim 1 : vector<16x128xf32>, i32 -> vector<16x128xf32>
    %121 = vector.broadcast %19 : vector<1x128xf32> to vector<16x128xf32>
    %122 = arith.mulf %120, %121 : vector<16x128xf32>
    %123 = arith.addf %119, %122 : vector<16x128xf32>
    %c3_i32_25 = arith.constant 3 : i32
    %124 = tpu.dynamic_rotate %1 by %c3_i32_25 dim 1 : vector<16x128xf32>, i32 -> vector<16x128xf32>
    %125 = vector.broadcast %31 : vector<1x128xf32> to vector<16x128xf32>
    %126 = arith.mulf %124, %125 : vector<16x128xf32>
    %127 = arith.addf %123, %126 : vector<16x128xf32>
    %c15_i32_26 = arith.constant 15 : i32
    %128 = tpu.dynamic_rotate %127 by %c15_i32_26 dim 0 : vector<16x128xf32>, i32 -> vector<16x128xf32>
    %129 = vector.broadcast %35 : vector<16x1xf32> to vector<16x128xf32>
    %130 = arith.mulf %128, %129 : vector<16x128xf32>
    %131 = arith.addf %127, %130 : vector<16x128xf32>
    %c1_i32_27 = arith.constant 1 : i32
    %132 = tpu.dynamic_rotate %127 by %c1_i32_27 dim 0 : vector<16x128xf32>, i32 -> vector<16x128xf32>
    %133 = vector.broadcast %47 : vector<16x1xf32> to vector<16x128xf32>
    %134 = arith.mulf %132, %133 : vector<16x128xf32>
    %135 = arith.addf %131, %134 : vector<16x128xf32>
    %c14_i32_28 = arith.constant 14 : i32
    %136 = tpu.dynamic_rotate %127 by %c14_i32_28 dim 0 : vector<16x128xf32>, i32 -> vector<16x128xf32>
    %137 = vector.broadcast %39 : vector<16x1xf32> to vector<16x128xf32>
    %138 = arith.mulf %136, %137 : vector<16x128xf32>
    %139 = arith.addf %135, %138 : vector<16x128xf32>
    %c2_i32_29 = arith.constant 2 : i32
    %140 = tpu.dynamic_rotate %127 by %c2_i32_29 dim 0 : vector<16x128xf32>, i32 -> vector<16x128xf32>
    %141 = vector.broadcast %51 : vector<16x1xf32> to vector<16x128xf32>
    %142 = arith.mulf %140, %141 : vector<16x128xf32>
    %143 = arith.addf %139, %142 : vector<16x128xf32>
    %c13_i32_30 = arith.constant 13 : i32
    %144 = tpu.dynamic_rotate %127 by %c13_i32_30 dim 0 : vector<16x128xf32>, i32 -> vector<16x128xf32>
    %145 = vector.broadcast %43 : vector<16x1xf32> to vector<16x128xf32>
    %146 = arith.mulf %144, %145 : vector<16x128xf32>
    %147 = arith.addf %143, %146 : vector<16x128xf32>
    %c3_i32_31 = arith.constant 3 : i32
    %148 = tpu.dynamic_rotate %127 by %c3_i32_31 dim 0 : vector<16x128xf32>, i32 -> vector<16x128xf32>
    %149 = vector.broadcast %55 : vector<16x1xf32> to vector<16x128xf32>
    %150 = arith.mulf %148, %149 : vector<16x128xf32>
    %151 = arith.addf %147, %150 : vector<16x128xf32>
    %152 = arith.mulf %0, %1 : vector<16x128xf32>
    %c127_i32_32 = arith.constant 127 : i32
    %153 = tpu.dynamic_rotate %152 by %c127_i32_32 dim 1 : vector<16x128xf32>, i32 -> vector<16x128xf32>
    %154 = vector.broadcast %11 : vector<1x128xf32> to vector<16x128xf32>
    %155 = arith.mulf %153, %154 : vector<16x128xf32>
    %156 = arith.addf %152, %155 : vector<16x128xf32>
    %c1_i32_33 = arith.constant 1 : i32
    %157 = tpu.dynamic_rotate %152 by %c1_i32_33 dim 1 : vector<16x128xf32>, i32 -> vector<16x128xf32>
    %158 = vector.broadcast %23 : vector<1x128xf32> to vector<16x128xf32>
    %159 = arith.mulf %157, %158 : vector<16x128xf32>
    %160 = arith.addf %156, %159 : vector<16x128xf32>
    %c126_i32_34 = arith.constant 126 : i32
    %161 = tpu.dynamic_rotate %152 by %c126_i32_34 dim 1 : vector<16x128xf32>, i32 -> vector<16x128xf32>
    %162 = vector.broadcast %15 : vector<1x128xf32> to vector<16x128xf32>
    %163 = arith.mulf %161, %162 : vector<16x128xf32>
    %164 = arith.addf %160, %163 : vector<16x128xf32>
    %c2_i32_35 = arith.constant 2 : i32
    %165 = tpu.dynamic_rotate %152 by %c2_i32_35 dim 1 : vector<16x128xf32>, i32 -> vector<16x128xf32>
    %166 = vector.broadcast %27 : vector<1x128xf32> to vector<16x128xf32>
    %167 = arith.mulf %165, %166 : vector<16x128xf32>
    %168 = arith.addf %164, %167 : vector<16x128xf32>
    %c125_i32_36 = arith.constant 125 : i32
    %169 = tpu.dynamic_rotate %152 by %c125_i32_36 dim 1 : vector<16x128xf32>, i32 -> vector<16x128xf32>
    %170 = vector.broadcast %19 : vector<1x128xf32> to vector<16x128xf32>
    %171 = arith.mulf %169, %170 : vector<16x128xf32>
    %172 = arith.addf %168, %171 : vector<16x128xf32>
    %c3_i32_37 = arith.constant 3 : i32
    %173 = tpu.dynamic_rotate %152 by %c3_i32_37 dim 1 : vector<16x128xf32>, i32 -> vector<16x128xf32>
    %174 = vector.broadcast %31 : vector<1x128xf32> to vector<16x128xf32>
    %175 = arith.mulf %173, %174 : vector<16x128xf32>
    %176 = arith.addf %172, %175 : vector<16x128xf32>
    %c15_i32_38 = arith.constant 15 : i32
    %177 = tpu.dynamic_rotate %176 by %c15_i32_38 dim 0 : vector<16x128xf32>, i32 -> vector<16x128xf32>
    %178 = vector.broadcast %35 : vector<16x1xf32> to vector<16x128xf32>
    %179 = arith.mulf %177, %178 : vector<16x128xf32>
    %180 = arith.addf %176, %179 : vector<16x128xf32>
    %c1_i32_39 = arith.constant 1 : i32
    %181 = tpu.dynamic_rotate %176 by %c1_i32_39 dim 0 : vector<16x128xf32>, i32 -> vector<16x128xf32>
    %182 = vector.broadcast %47 : vector<16x1xf32> to vector<16x128xf32>
    %183 = arith.mulf %181, %182 : vector<16x128xf32>
    %184 = arith.addf %180, %183 : vector<16x128xf32>
    %c14_i32_40 = arith.constant 14 : i32
    %185 = tpu.dynamic_rotate %176 by %c14_i32_40 dim 0 : vector<16x128xf32>, i32 -> vector<16x128xf32>
    %186 = vector.broadcast %39 : vector<16x1xf32> to vector<16x128xf32>
    %187 = arith.mulf %185, %186 : vector<16x128xf32>
    %188 = arith.addf %184, %187 : vector<16x128xf32>
    %c2_i32_41 = arith.constant 2 : i32
    %189 = tpu.dynamic_rotate %176 by %c2_i32_41 dim 0 : vector<16x128xf32>, i32 -> vector<16x128xf32>
    %190 = vector.broadcast %51 : vector<16x1xf32> to vector<16x128xf32>
    %191 = arith.mulf %189, %190 : vector<16x128xf32>
    %192 = arith.addf %188, %191 : vector<16x128xf32>
    %c13_i32_42 = arith.constant 13 : i32
    %193 = tpu.dynamic_rotate %176 by %c13_i32_42 dim 0 : vector<16x128xf32>, i32 -> vector<16x128xf32>
    %194 = vector.broadcast %43 : vector<16x1xf32> to vector<16x128xf32>
    %195 = arith.mulf %193, %194 : vector<16x128xf32>
    %196 = arith.addf %192, %195 : vector<16x128xf32>
    %c3_i32_43 = arith.constant 3 : i32
    %197 = tpu.dynamic_rotate %176 by %c3_i32_43 dim 0 : vector<16x128xf32>, i32 -> vector<16x128xf32>
    %198 = vector.broadcast %55 : vector<16x1xf32> to vector<16x128xf32>
    %199 = arith.mulf %197, %198 : vector<16x128xf32>
    %200 = arith.addf %196, %199 : vector<16x128xf32>
    %201 = arith.mulf %103, %151 : vector<16x128xf32>
    %cst = arith.constant 0.0204081628 : f32
    %202 = vector.broadcast %cst : f32 to vector<16x128xf32>
    %203 = arith.mulf %201, %202 : vector<16x128xf32>
    %204 = arith.subf %200, %203 : vector<16x128xf32>
    %205 = arith.mulf %0, %0 : vector<16x128xf32>
    %c127_i32_44 = arith.constant 127 : i32
    %206 = tpu.dynamic_rotate %205 by %c127_i32_44 dim 1 : vector<16x128xf32>, i32 -> vector<16x128xf32>
    %207 = vector.broadcast %11 : vector<1x128xf32> to vector<16x128xf32>
    %208 = arith.mulf %206, %207 : vector<16x128xf32>
    %209 = arith.addf %205, %208 : vector<16x128xf32>
    %c1_i32_45 = arith.constant 1 : i32
    %210 = tpu.dynamic_rotate %205 by %c1_i32_45 dim 1 : vector<16x128xf32>, i32 -> vector<16x128xf32>
    %211 = vector.broadcast %23 : vector<1x128xf32> to vector<16x128xf32>
    %212 = arith.mulf %210, %211 : vector<16x128xf32>
    %213 = arith.addf %209, %212 : vector<16x128xf32>
    %c126_i32_46 = arith.constant 126 : i32
    %214 = tpu.dynamic_rotate %205 by %c126_i32_46 dim 1 : vector<16x128xf32>, i32 -> vector<16x128xf32>
    %215 = vector.broadcast %15 : vector<1x128xf32> to vector<16x128xf32>
    %216 = arith.mulf %214, %215 : vector<16x128xf32>
    %217 = arith.addf %213, %216 : vector<16x128xf32>
    %c2_i32_47 = arith.constant 2 : i32
    %218 = tpu.dynamic_rotate %205 by %c2_i32_47 dim 1 : vector<16x128xf32>, i32 -> vector<16x128xf32>
    %219 = vector.broadcast %27 : vector<1x128xf32> to vector<16x128xf32>
    %220 = arith.mulf %218, %219 : vector<16x128xf32>
    %221 = arith.addf %217, %220 : vector<16x128xf32>
    %c125_i32_48 = arith.constant 125 : i32
    %222 = tpu.dynamic_rotate %205 by %c125_i32_48 dim 1 : vector<16x128xf32>, i32 -> vector<16x128xf32>
    %223 = vector.broadcast %19 : vector<1x128xf32> to vector<16x128xf32>
    %224 = arith.mulf %222, %223 : vector<16x128xf32>
    %225 = arith.addf %221, %224 : vector<16x128xf32>
    %c3_i32_49 = arith.constant 3 : i32
    %226 = tpu.dynamic_rotate %205 by %c3_i32_49 dim 1 : vector<16x128xf32>, i32 -> vector<16x128xf32>
    %227 = vector.broadcast %31 : vector<1x128xf32> to vector<16x128xf32>
    %228 = arith.mulf %226, %227 : vector<16x128xf32>
    %229 = arith.addf %225, %228 : vector<16x128xf32>
    %c15_i32_50 = arith.constant 15 : i32
    %230 = tpu.dynamic_rotate %229 by %c15_i32_50 dim 0 : vector<16x128xf32>, i32 -> vector<16x128xf32>
    %231 = vector.broadcast %35 : vector<16x1xf32> to vector<16x128xf32>
    %232 = arith.mulf %230, %231 : vector<16x128xf32>
    %233 = arith.addf %229, %232 : vector<16x128xf32>
    %c1_i32_51 = arith.constant 1 : i32
    %234 = tpu.dynamic_rotate %229 by %c1_i32_51 dim 0 : vector<16x128xf32>, i32 -> vector<16x128xf32>
    %235 = vector.broadcast %47 : vector<16x1xf32> to vector<16x128xf32>
    %236 = arith.mulf %234, %235 : vector<16x128xf32>
    %237 = arith.addf %233, %236 : vector<16x128xf32>
    %c14_i32_52 = arith.constant 14 : i32
    %238 = tpu.dynamic_rotate %229 by %c14_i32_52 dim 0 : vector<16x128xf32>, i32 -> vector<16x128xf32>
    %239 = vector.broadcast %39 : vector<16x1xf32> to vector<16x128xf32>
    %240 = arith.mulf %238, %239 : vector<16x128xf32>
    %241 = arith.addf %237, %240 : vector<16x128xf32>
    %c2_i32_53 = arith.constant 2 : i32
    %242 = tpu.dynamic_rotate %229 by %c2_i32_53 dim 0 : vector<16x128xf32>, i32 -> vector<16x128xf32>
    %243 = vector.broadcast %51 : vector<16x1xf32> to vector<16x128xf32>
    %244 = arith.mulf %242, %243 : vector<16x128xf32>
    %245 = arith.addf %241, %244 : vector<16x128xf32>
    %c13_i32_54 = arith.constant 13 : i32
    %246 = tpu.dynamic_rotate %229 by %c13_i32_54 dim 0 : vector<16x128xf32>, i32 -> vector<16x128xf32>
    %247 = vector.broadcast %43 : vector<16x1xf32> to vector<16x128xf32>
    %248 = arith.mulf %246, %247 : vector<16x128xf32>
    %249 = arith.addf %245, %248 : vector<16x128xf32>
    %c3_i32_55 = arith.constant 3 : i32
    %250 = tpu.dynamic_rotate %229 by %c3_i32_55 dim 0 : vector<16x128xf32>, i32 -> vector<16x128xf32>
    %251 = vector.broadcast %55 : vector<16x1xf32> to vector<16x128xf32>
    %252 = arith.mulf %250, %251 : vector<16x128xf32>
    %253 = arith.addf %249, %252 : vector<16x128xf32>
    %254 = arith.mulf %103, %103 : vector<16x128xf32>
    %cst_56 = arith.constant 0.0204081628 : f32
    %255 = vector.broadcast %cst_56 : f32 to vector<16x128xf32>
    %256 = arith.mulf %254, %255 : vector<16x128xf32>
    %257 = arith.subf %253, %256 : vector<16x128xf32>
    %258 = arith.mulf %1, %1 : vector<16x128xf32>
    %c127_i32_57 = arith.constant 127 : i32
    %259 = tpu.dynamic_rotate %258 by %c127_i32_57 dim 1 : vector<16x128xf32>, i32 -> vector<16x128xf32>
    %260 = vector.broadcast %11 : vector<1x128xf32> to vector<16x128xf32>
    %261 = arith.mulf %259, %260 : vector<16x128xf32>
    %262 = arith.addf %258, %261 : vector<16x128xf32>
    %c1_i32_58 = arith.constant 1 : i32
    %263 = tpu.dynamic_rotate %258 by %c1_i32_58 dim 1 : vector<16x128xf32>, i32 -> vector<16x128xf32>
    %264 = vector.broadcast %23 : vector<1x128xf32> to vector<16x128xf32>
    %265 = arith.mulf %263, %264 : vector<16x128xf32>
    %266 = arith.addf %262, %265 : vector<16x128xf32>
    %c126_i32_59 = arith.constant 126 : i32
    %267 = tpu.dynamic_rotate %258 by %c126_i32_59 dim 1 : vector<16x128xf32>, i32 -> vector<16x128xf32>
    %268 = vector.broadcast %15 : vector<1x128xf32> to vector<16x128xf32>
    %269 = arith.mulf %267, %268 : vector<16x128xf32>
    %270 = arith.addf %266, %269 : vector<16x128xf32>
    %c2_i32_60 = arith.constant 2 : i32
    %271 = tpu.dynamic_rotate %258 by %c2_i32_60 dim 1 : vector<16x128xf32>, i32 -> vector<16x128xf32>
    %272 = vector.broadcast %27 : vector<1x128xf32> to vector<16x128xf32>
    %273 = arith.mulf %271, %272 : vector<16x128xf32>
    %274 = arith.addf %270, %273 : vector<16x128xf32>
    %c125_i32_61 = arith.constant 125 : i32
    %275 = tpu.dynamic_rotate %258 by %c125_i32_61 dim 1 : vector<16x128xf32>, i32 -> vector<16x128xf32>
    %276 = vector.broadcast %19 : vector<1x128xf32> to vector<16x128xf32>
    %277 = arith.mulf %275, %276 : vector<16x128xf32>
    %278 = arith.addf %274, %277 : vector<16x128xf32>
    %c3_i32_62 = arith.constant 3 : i32
    %279 = tpu.dynamic_rotate %258 by %c3_i32_62 dim 1 : vector<16x128xf32>, i32 -> vector<16x128xf32>
    %280 = vector.broadcast %31 : vector<1x128xf32> to vector<16x128xf32>
    %281 = arith.mulf %279, %280 : vector<16x128xf32>
    %282 = arith.addf %278, %281 : vector<16x128xf32>
    %c15_i32_63 = arith.constant 15 : i32
    %283 = tpu.dynamic_rotate %282 by %c15_i32_63 dim 0 : vector<16x128xf32>, i32 -> vector<16x128xf32>
    %284 = vector.broadcast %35 : vector<16x1xf32> to vector<16x128xf32>
    %285 = arith.mulf %283, %284 : vector<16x128xf32>
    %286 = arith.addf %282, %285 : vector<16x128xf32>
    %c1_i32_64 = arith.constant 1 : i32
    %287 = tpu.dynamic_rotate %282 by %c1_i32_64 dim 0 : vector<16x128xf32>, i32 -> vector<16x128xf32>
    %288 = vector.broadcast %47 : vector<16x1xf32> to vector<16x128xf32>
    %289 = arith.mulf %287, %288 : vector<16x128xf32>
    %290 = arith.addf %286, %289 : vector<16x128xf32>
    %c14_i32_65 = arith.constant 14 : i32
    %291 = tpu.dynamic_rotate %282 by %c14_i32_65 dim 0 : vector<16x128xf32>, i32 -> vector<16x128xf32>
    %292 = vector.broadcast %39 : vector<16x1xf32> to vector<16x128xf32>
    %293 = arith.mulf %291, %292 : vector<16x128xf32>
    %294 = arith.addf %290, %293 : vector<16x128xf32>
    %c2_i32_66 = arith.constant 2 : i32
    %295 = tpu.dynamic_rotate %282 by %c2_i32_66 dim 0 : vector<16x128xf32>, i32 -> vector<16x128xf32>
    %296 = vector.broadcast %51 : vector<16x1xf32> to vector<16x128xf32>
    %297 = arith.mulf %295, %296 : vector<16x128xf32>
    %298 = arith.addf %294, %297 : vector<16x128xf32>
    %c13_i32_67 = arith.constant 13 : i32
    %299 = tpu.dynamic_rotate %282 by %c13_i32_67 dim 0 : vector<16x128xf32>, i32 -> vector<16x128xf32>
    %300 = vector.broadcast %43 : vector<16x1xf32> to vector<16x128xf32>
    %301 = arith.mulf %299, %300 : vector<16x128xf32>
    %302 = arith.addf %298, %301 : vector<16x128xf32>
    %c3_i32_68 = arith.constant 3 : i32
    %303 = tpu.dynamic_rotate %282 by %c3_i32_68 dim 0 : vector<16x128xf32>, i32 -> vector<16x128xf32>
    %304 = vector.broadcast %55 : vector<16x1xf32> to vector<16x128xf32>
    %305 = arith.mulf %303, %304 : vector<16x128xf32>
    %306 = arith.addf %302, %305 : vector<16x128xf32>
    %307 = arith.mulf %151, %151 : vector<16x128xf32>
    %cst_69 = arith.constant 0.0204081628 : f32
    %308 = vector.broadcast %cst_69 : f32 to vector<16x128xf32>
    %309 = arith.mulf %307, %308 : vector<16x128xf32>
    %310 = arith.subf %306, %309 : vector<16x128xf32>
    %311 = arith.mulf %204, %204 : vector<16x128xf32>
    %312 = arith.mulf %257, %310 : vector<16x128xf32>
    %cst_70 = arith.constant 9.99999974E-6 : f32
    %313 = vector.broadcast %cst_70 : f32 to vector<16x128xf32>
    %314 = arith.addf %312, %313 : vector<16x128xf32>
    %315 = arith.divf %311, %314 : vector<16x128xf32>
    %316 = vector.shape_cast %315 : vector<16x128xf32> to vector<2x8x128xf32>
    %cst_71 = arith.constant dense<0.000000e+00> : vector<8x128xf32>
    %317 = vector.multi_reduction <add>, %316, %cst_71 [0] : vector<2x8x128xf32> to vector<8x128xf32>
    %c0_72 = arith.constant 0 : index
    %c0_73 = arith.constant 0 : index
    %318 = vector.load %arg3[%c0_72, %c0_73] : memref<8x128xf32, #tpu.memory_space<vmem>>, vector<8x128xf32>
    tpu.vector_store %arg3[%c0_72, %c0_73], %317 {strides = array<i32>} : memref<8x128xf32, #tpu.memory_space<vmem>>, vector<8x128xf32>,
    return
  }
  func.func @transform_0(%arg0: i32) -> (i32, i32) {
    %c0_i32 = arith.constant 0 : i32
    %c0_i32_0 = arith.constant 0 : i32
    return %arg0, %c0_i32 : i32, i32
  }
  func.func @transform_1(%arg0: i32) -> (i32, i32) {
    %c0_i32 = arith.constant 0 : i32
    %c0_i32_0 = arith.constant 0 : i32
    return %arg0, %c0_i32 : i32, i32
  }
  func.func @transform_2(%arg0: i32) -> (i32, i32) {
    %c0_i32 = arith.constant 0 : i32
    %c0_i32_0 = arith.constant 0 : i32
    return %arg0, %c0_i32 : i32, i32
  }
}

</mosaic_0001>

<bundles_post_ra>
// kernel: tpu_custom_call.1
= control target key start
LH: loop header
LB: loop body
LE: loop exit
PB: predicated region body
PF: predicated region fallthrough
CT: control target
= control target key end

     0   :  { %7 = vsyncpa [#allocation3], 0  ;;  %s1376_s0 = inlined_call_operand.hbm [shape: f32[16,128], index: 0, kind: input, shape index: {}]   ;;  %s1377_s1 = inlined_call_operand.hbm [shape: f32[16,128], index: 1, kind: input, shape index: {}]   ;;  %s1378_s2 = inlined_call_operand.hbm [shape: f32[8,128], index: 2, kind: output, shape index: {}]  }
   0x1   :  { %8 = vsyncpa [#allocation6], 0 }
   0x2   :  { %9 = vsyncpa [#allocation4], 0  ;;  %s738_s9 = smov [#allocation2]  }
   0x3   :  { %s15_s10 = sshll.u32 %s738_s9, 4  ;;  %s16_s10 = int_to_ptr.vmem [resolvable:$true] %s15_s10 }
   0x4   :  { %s680_s11 = scalar_lea.vmem %s16_s10, 256  ;;  %p685_p1 = scmp.lt.s32.totalorder %s16_s10, %s16_s10 }
   0x5   :  { %p681_p0 = scmp.ne.s32.totalorder %s16_s10, %s680_s11  ;;  %p686_p2 = scmp.lt.s32.totalorder %s680_s11, %s680_s11 }
   0x7   :  { %p687_p3 = por %p686_p2, %p685_p1 }
   0x9   :  { %p688_p4 = pnand %p687_p3, %p681_p0 }
   0xb   :  { %691 = shalt.err (!%p688_p4)
}
   0xc   :  { %s739_s12 = smov 128   ;;  %s740_s13 = smov 8  }
   0xd   :  { %21 = dma.hbm_to_vmem [thread:$0]  %s1376_s0, 256, %s16_s10, [#allocation3], %s739_s12, %s739_s12, %s740_s13  }
   0xe   :  { %s741_s16 = smov [#allocation5]  }
   0xf   :  { %s27_s17 = sshll.u32 %s741_s16, 4  ;;  %s28_s17 = int_to_ptr.vmem [resolvable:$true] %s27_s17 }
  0x10   :  { %s700_s18 = scalar_lea.vmem %s28_s17, 256  ;;  %p705_p6 = scmp.lt.s32.totalorder %s28_s17, %s28_s17 }
  0x11   :  { %p701_p5 = scmp.ne.s32.totalorder %s28_s17, %s700_s18  ;;  %p706_p7 = scmp.lt.s32.totalorder %s700_s18, %s700_s18 }
  0x13   :  { %p707_p8 = por %p706_p7, %p705_p6 }
  0x15   :  { %p708_p9 = pnand %p707_p8, %p701_p5 }
  0x17   :  { %711 = shalt.err (!%p708_p9)
}
  0x18   :  { %33 = dma.hbm_to_vmem [thread:$0]  %s1377_s1, 256, %s28_s17, [#allocation6], %s739_s12, %s739_s12, %s740_s13  }
  0x19   :  { %732 = dma.done.wait [#allocation3], 256  }
  0x1a   :  { %733 = vsyncadd [#allocation3], 4294967040 }
  0x1b   :  { %734 = dma.done.wait [#allocation6], 256  }
  0x1c   :  { %735 = vsyncadd [#allocation6], 4294967040  ;;  %v771_v0 = vld [vmem:[#allocation5] sm:$0xff]  ;;  %v773_v1 = vld [vmem:[#allocation2] sm:$0xff]  ;;  %s742_s0 = smov 127   ;;  %s743_s1 = smov 1   ;;  %v44_v10 = vlaneseq }
  0x1d   :  { %208 = vrot.lane.b32.xlu1 %v771_v0, %s742_s0  ;;  %106 = vrot.lane.b32.xlu0 %v773_v1, %s742_s0  ;;  %v779_v2 = vld [vmem:[#allocation5 + $0x8] sm:$0xff]  ;;  %v781_v3 = vld [vmem:[#allocation2 + $0x8] sm:$0xff]  ;;  %s744_s21 = smov 126   ;;  %v809_v5 = vmul.f32 %v773_v1, %v773_v1  ;;  %v821_v7 = vmul.f32 %v771_v0, %v771_v0  ;;  %s745_s22 = smov 2   ;;  %v897_v9 = vmul.f32 %v771_v0, %v773_v1  ;;  %v748_v15 = vmov 0.0  }
  0x1e   :  { %v805_v4 = vmul.f32 %v781_v3, %v781_v3  ;;  %v817_v6 = vmul.f32 %v779_v2, %v779_v2  ;;  %s746_s23 = smov 125   ;;  %s747_s24 = smov 3   ;;  %v893_v8 = vmul.f32 %v779_v2, %v781_v3  ;;  %v45_v11 = vand.u32 127, %v44_v10 }
  0x1f   :  { %v959_v63 = vshrl.u32 %v44_v10, 7  ;;  %s749_s25 = smov [#allocation7]  }
  0x20   :  { %v916_v12 = vand.u32 15, %v45_v11  ;;  %s634_s26 = sshll.u32 %s749_s25, 4  ;;  %s635_s26 = int_to_ptr.vmem [resolvable:$true] %s634_s26 }
  0x21   :  { %210 = vrot.lane.b32.xlu1 %v779_v2, %s742_s0  ;;  %108 = vrot.lane.b32.xlu0 %v781_v3, %s742_s0  ;;  %v49_v11 = vadd.s32 8, %v959_v63  ;;  %vm156_vm12 = vcmp.lt.s32.totalorder %v959_v63, 7  ;;  %vm165_vm13 = vcmp.lt.s32.totalorder %v959_v63, 1  ;;  %vm174_vm14 = vcmp.lt.s32.totalorder %v959_v63, 6  ;;  %s712_s27 = scalar_lea.vmem %s635_s26, 128  ;;  %p717_p11 = scmp.lt.s32.totalorder %s635_s26, %s635_s26 }
  0x22   :  { %vm52_vm0 = vcmp.lt.s32.totalorder %v916_v12, 15  ;;  %vm61_vm1 = vcmp.ge.s32.totalorder %v916_v12, 1  ;;  %vm55_vm2 = vcmp.lt.s32.totalorder %v916_v12, 14  ;;  %vm64_vm3 = vcmp.ge.s32.totalorder %v916_v12, 2  ;;  %p713_p10 = scmp.ne.s32.totalorder %s635_s26, %s712_s27  ;;  %p718_p12 = scmp.lt.s32.totalorder %s712_s27, %s712_s27 }
  0x23   :  { %v924_v16 = vsel %vm52_vm0, 1.0, %v748_v15  ;;  %v934_v21 = vsel %vm61_vm1, 1.0, %v748_v15  ;;  %v948_v38 = vsel %vm55_vm2, 1.0, %v748_v15  ;;  %vm58_vm4 = vcmp.lt.s32.totalorder %v916_v12, 13 }
  0x24   :  { %vm67_vm5 = vcmp.ge.s32.totalorder %v916_v12, 3  ;;  %v971_v10 = vsel %vm64_vm3, 1.0, %v748_v15  ;;  %vm183_vm15 = vcmp.lt.s32.totalorder %v959_v63, 2  ;;  %vm192_vm0 = vcmp.lt.s32.totalorder %v959_v63, 5  ;;  %p719_p13 = por %p718_p12, %p717_p11 }
  0x25   :  { %116 = vrot.lane.b32.xlu1 %v781_v3, %s743_s1  ;;  %114 = vrot.lane.b32.xlu0 %v773_v1, %s743_s1  ;;  %vm201_vm1 = vcmp.lt.s32.totalorder %v959_v63, 3 }
  0x26   :  { %p720_p0 = pnand %p719_p13, %p713_p10 }
  0x29   :  { %218 = vrot.lane.b32.xlu1 %v779_v2, %s743_s1  ;;  %216 = vrot.lane.b32.xlu0 %v771_v0, %s743_s1 }
  0x2d   :  { %124 = vrot.lane.b32.xlu1 %v781_v3, %s744_s21  ;;  %122 = vrot.lane.b32.xlu0 %v773_v1, %s744_s21 }
  0x31   :  { %226 = vrot.lane.b32.xlu1 %v779_v2, %s744_s21  ;;  %224 = vrot.lane.b32.xlu0 %v771_v0, %s744_s21 }
  0x35   :  { %412 = vrot.lane.b32.xlu1 %v805_v4, %s742_s0  ;;  %410 = vrot.lane.b32.xlu0 %v809_v5, %s742_s0 }
  0x39   :  { %516 = vrot.lane.b32.xlu1 %v817_v6, %s742_s0  ;;  %514 = vrot.lane.b32.xlu0 %v821_v7, %s742_s0 }
  0x3d   :  { %132 = vrot.lane.b32.xlu1 %v781_v3, %s745_s22  ;;  %130 = vrot.lane.b32.xlu0 %v773_v1, %s745_s22 }
  0x41   :  { %234 = vrot.lane.b32.xlu1 %v779_v2, %s745_s22  ;;  %232 = vrot.lane.b32.xlu0 %v771_v0, %s745_s22 }
  0x45   :  { %420 = vrot.lane.b32.xlu1 %v805_v4, %s743_s1  ;;  %418 = vrot.lane.b32.xlu0 %v809_v5, %s743_s1 }
  0x49   :  { %524 = vrot.lane.b32.xlu1 %v817_v6, %s743_s1  ;;  %522 = vrot.lane.b32.xlu0 %v821_v7, %s743_s1 }
  0x4d   :  { %140 = vrot.lane.b32.xlu1 %v781_v3, %s746_s23  ;;  %138 = vrot.lane.b32.xlu0 %v773_v1, %s746_s23 }
  0x51   :  { %242 = vrot.lane.b32.xlu1 %v779_v2, %s746_s23  ;;  %240 = vrot.lane.b32.xlu0 %v771_v0, %s746_s23 }
  0x55   :  { %428 = vrot.lane.b32.xlu1 %v805_v4, %s744_s21  ;;  %426 = vrot.lane.b32.xlu0 %v809_v5, %s744_s21 }
  0x59   :  { %532 = vrot.lane.b32.xlu1 %v817_v6, %s744_s21  ;;  %530 = vrot.lane.b32.xlu0 %v821_v7, %s744_s21 }
  0x5d   :  { %148 = vrot.lane.b32.xlu1 %v781_v3, %s747_s24  ;;  %146 = vrot.lane.b32.xlu0 %v773_v1, %s747_s24 }
  0x61   :  { %250 = vrot.lane.b32.xlu1 %v779_v2, %s747_s24  ;;  %248 = vrot.lane.b32.xlu0 %v771_v0, %s747_s24 }
  0x65   :  { %436 = vrot.lane.b32.xlu1 %v805_v4, %s745_s22  ;;  %434 = vrot.lane.b32.xlu0 %v809_v5, %s745_s22 }
  0x69   :  { %540 = vrot.lane.b32.xlu1 %v817_v6, %s745_s22  ;;  %538 = vrot.lane.b32.xlu0 %v821_v7, %s745_s22 }
  0x6d   :  { %444 = vrot.lane.b32.xlu1 %v805_v4, %s746_s23  ;;  %442 = vrot.lane.b32.xlu0 %v809_v5, %s746_s23 }
  0x71   :  { %548 = vrot.lane.b32.xlu1 %v817_v6, %s746_s23  ;;  %546 = vrot.lane.b32.xlu0 %v821_v7, %s746_s23 }
  0x75   :  { %452 = vrot.lane.b32.xlu1 %v805_v4, %s747_s24  ;;  %450 = vrot.lane.b32.xlu0 %v809_v5, %s747_s24 }
  0x79   :  { %556 = vrot.lane.b32.xlu1 %v817_v6, %s747_s24  ;;  %554 = vrot.lane.b32.xlu0 %v821_v7, %s747_s24 }
  0x7d   :  { %308 = vrot.lane.b32.xlu1 %v893_v8, %s742_s0  ;;  %306 = vrot.lane.b32.xlu0 %v897_v9, %s742_s0 }
  0x81   :  { %316 = vrot.lane.b32.xlu1 %v893_v8, %s743_s1  ;;  %314 = vrot.lane.b32.xlu0 %v897_v9, %s743_s1 }
  0x85   :  { %324 = vrot.lane.b32.xlu1 %v893_v8, %s744_s21  ;;  %322 = vrot.lane.b32.xlu0 %v897_v9, %s744_s21 }
  0x89   :  { %332 = vrot.lane.b32.xlu1 %v893_v8, %s745_s22  ;;  %330 = vrot.lane.b32.xlu0 %v897_v9, %s745_s22 }
  0x8d   :  { %340 = vrot.lane.b32.xlu1 %v893_v8, %s746_s23  ;;  %338 = vrot.lane.b32.xlu0 %v897_v9, %s746_s23 }
  0x8f   :  { %v209_v13 = vpop.permute.xlu1 %208  ;;  %v107_v14 = vpop.permute.xlu0 %106 }
  0x90   :  { %v110_v17 = vmul.f32 %v924_v16, %v107_v14  ;;  %v212_v22 = vmul.f32 %v924_v16, %v209_v13 }
  0x91   :  { %348 = vrot.lane.b32.xlu1 %v893_v8, %s747_s24  ;;  %346 = vrot.lane.b32.xlu0 %v897_v9, %s747_s24 }
  0x92   :  { %v112_v23 = vadd.f32 %v110_v17, %v773_v1  ;;  %v214_v34 = vadd.f32 %v212_v22, %v771_v0  ;;  %v51_v17 = vand.u32 15, %v49_v11  ;;  %v976_v22 = vsel %vm58_vm4, 1.0, %v748_v15 }
  0x93   :  { %v211_v18 = vpop.permute.xlu1 %210  ;;  %v109_v19 = vpop.permute.xlu0 %108 }
  0x94   :  { %v111_v20 = vmul.f32 %v924_v16, %v109_v19  ;;  %v213_v26 = vmul.f32 %v924_v16, %v211_v18  ;;  %v50_v18 = vand.u32 15, %v959_v63  ;;  %vm71_vm6 = vcmp.lt.s32.totalorder %v51_v17, 15 }
  0x95   :  { %vm77_vm7 = vcmp.lt.s32.totalorder %v51_v17, 14  ;;  %vm83_vm8 = vcmp.lt.s32.totalorder %v51_v17, 13 }
  0x96   :  { %v113_v27 = vadd.f32 %v111_v20, %v781_v3  ;;  %v215_v35 = vadd.f32 %v213_v26, %v779_v2  ;;  %vm88_vm9 = vcmp.ge.s32.totalorder %v50_v18, 1  ;;  %vm94_vm10 = vcmp.ge.s32.totalorder %v50_v18, 2 }
  0x97   :  { %v117_v24 = vpop.permute.xlu1 %116  ;;  %v115_v25 = vpop.permute.xlu0 %114  ;;  %vm100_vm11 = vcmp.ge.s32.totalorder %v50_v18, 3  ;;  %v987_v26 = vsel %vm77_vm7, 1.0, %v748_v15 }
  0x98   :  { %v119_v28 = vmul.f32 %v934_v21, %v117_v24  ;;  %v118_v29 = vmul.f32 %v934_v21, %v115_v25  ;;  %v984_v25 = vsel %vm71_vm6, 1.0, %v748_v15 }
  0x9a   :  { %v121_v30 = vadd.f32 %v119_v28, %v113_v27  ;;  %v120_v31 = vadd.f32 %v118_v29, %v112_v23  ;;  %v979_v23 = vsel %vm67_vm5, 1.0, %v748_v15 }
  0x9b   :  { %v219_v32 = vpop.permute.xlu1 %218  ;;  %v217_v33 = vpop.permute.xlu0 %216 }
  0x9c   :  { %v221_v36 = vmul.f32 %v934_v21, %v219_v32  ;;  %v220_v37 = vmul.f32 %v934_v21, %v217_v33  ;;  %v1000_v32 = vsel %vm88_vm9, 1.0, %v748_v15 }
  0x9e   :  { %v223_v39 = vadd.f32 %v221_v36, %v215_v35  ;;  %v222_v40 = vadd.f32 %v220_v37, %v214_v34  ;;  %v1005_v35 = vsel %vm94_vm10, 1.0, %v748_v15  ;;  %v1008_v36 = vsel %vm100_vm11, 1.0, %v748_v15 }
  0x9f   :  { %v125_v41 = vpop.permute.xlu1 %124  ;;  %v123_v42 = vpop.permute.xlu0 %122 }
  0xa0   :  { %v127_v43 = vmul.f32 %v948_v38, %v125_v41  ;;  %v126_v44 = vmul.f32 %v948_v38, %v123_v42 }
  0xa2   :  { %v129_v45 = vadd.f32 %v127_v43, %v121_v30  ;;  %v128_v46 = vadd.f32 %v126_v44, %v120_v31  ;;  %v997_v31 = vsel %vm83_vm8, 1.0, %v748_v15 }
  0xa3   :  { %v227_v47 = vpop.permute.xlu1 %226  ;;  %v225_v48 = vpop.permute.xlu0 %224 }
  0xa4   :  { %v229_v49 = vmul.f32 %v948_v38, %v227_v47  ;;  %v228_v50 = vmul.f32 %v948_v38, %v225_v48 }
  0xa6   :  { %v954_v51 = vadd.f32 %v229_v49, %v223_v39  ;;  %v956_v52 = vadd.f32 %v228_v50, %v222_v40 }
  0xa7   :  { %v413_v53 = vpop.permute.xlu1 %412  ;;  %v411_v54 = vpop.permute.xlu0 %410 }
  0xa8   :  { %v415_v27 = vmul.f32 %v924_v16, %v413_v53  ;;  %v414_v28 = vmul.f32 %v924_v16, %v411_v54 }
  0xaa   :  { %v417_v15 = vadd.f32 %v415_v27, %v805_v4  ;;  %v416_v48 = vadd.f32 %v414_v28, %v809_v5 }
  0xab   :  { %v517_v55 = vpop.permute.xlu1 %516  ;;  %v515_v56 = vpop.permute.xlu0 %514 }
  0xac   :  { %v519_v37 = vmul.f32 %v924_v16, %v517_v55  ;;  %v518_v39 = vmul.f32 %v924_v16, %v515_v56 }
  0xaf   :  { %v133_v57 = vpop.permute.xlu1 %132  ;;  %v131_v58 = vpop.permute.xlu0 %130 }
  0xb0   :  { %v135_v12 = vmul.f32 %v971_v10, %v133_v57  ;;  %v134_v24 = vmul.f32 %v971_v10, %v131_v58  ;;  %v521_v57 = vadd.f32 %v519_v37, %v817_v6  ;;  %v1026_v58 = vadd.f32 %v518_v39, %v821_v7 }
  0xb2   :  { %v137_v42 = vadd.f32 %v135_v12, %v129_v45  ;;  %v136_v43 = vadd.f32 %v134_v24, %v128_v46 }
  0xb3   :  { %v235_v59 = vpop.permute.xlu1 %234  ;;  %v233_v60 = vpop.permute.xlu0 %232 }
  0xb4   :  { %v237_v40 = vmul.f32 %v971_v10, %v235_v59  ;;  %v236_v41 = vmul.f32 %v971_v10, %v233_v60 }
  0xb6   :  { %v239_v4 = vadd.f32 %v237_v40, %v954_v51  ;;  %v238_v5 = vadd.f32 %v236_v41, %v956_v52 }
  0xb7   :  { %v421_v61 = vpop.permute.xlu1 %420  ;;  %v419_v62 = vpop.permute.xlu0 %418 }
  0xb8   :  { %v423_v44 = vmul.f32 %v934_v21, %v421_v61  ;;  %v422_v47 = vmul.f32 %v934_v21, %v419_v62 }
  0xba   :  { %v425_v59 = vadd.f32 %v423_v44, %v417_v15  ;;  %v424_v60 = vadd.f32 %v422_v47, %v416_v48 }
  0xbb   :  { %v961_v0 = vpop.permute.xlu1 %524  ;;  %v963_v1 = vpop.permute.xlu0 %522 }
  0xbc   :  { %v1066_v44 = vmul.f32 %v934_v21, %v963_v1 }
  0xbf   :  { %v141_v2 = vpop.permute.xlu1 %140  ;;  %v139_v3 = vpop.permute.xlu0 %138 }
  0xc0   :  { %v143_v33 = vmul.f32 %v976_v22, %v141_v2  ;;  %v142_v34 = vmul.f32 %v976_v22, %v139_v3  ;;  %v527_v2 = vmul.f32 %v934_v21, %v961_v0 }
  0xc2   :  { %v145_v55 = vadd.f32 %v143_v33, %v137_v42  ;;  %v144_v56 = vadd.f32 %v142_v34, %v136_v43  ;;  %v1062_v43 = vadd.f32 %v527_v2, %v521_v57 }
  0xc3   :  { %v243_v13 = vpop.permute.xlu1 %242  ;;  %v241_v14 = vpop.permute.xlu0 %240 }
  0xc4   :  { %v245_v49 = vmul.f32 %v976_v22, %v243_v13  ;;  %v244_v50 = vmul.f32 %v976_v22, %v241_v14 }
  0xc6   :  { %v247_v3 = vadd.f32 %v245_v49, %v239_v4  ;;  %v246_v6 = vadd.f32 %v244_v50, %v238_v5 }
  0xc7   :  { %v429_v19 = vpop.permute.xlu1 %428  ;;  %v973_v20 = vpop.permute.xlu0 %426 }
  0xc8   :  { %v431_v7 = vmul.f32 %v948_v38, %v429_v19  ;;  %v430_v15 = vmul.f32 %v948_v38, %v973_v20 }
  0xca   :  { %v433_v47 = vadd.f32 %v431_v7, %v425_v59  ;;  %v432_v59 = vadd.f32 %v430_v15, %v424_v60 }
  0xcb   :  { %v991_v29 = vpop.permute.xlu1 %532  ;;  %v993_v30 = vpop.permute.xlu0 %530 }
  0xcc   :  { %v1095_v60 = vmul.f32 %v948_v38, %v993_v30 }
  0xcf   :  { %v149_v53 = vpop.permute.xlu1 %148  ;;  %v147_v54 = vpop.permute.xlu0 %146 }
  0xd0   :  { %v151_v45 = vmul.f32 %v979_v23, %v149_v53  ;;  %v150_v46 = vmul.f32 %v979_v23, %v147_v54 }
  0xd2   :  { %v1030_v61 = vadd.f32 %v151_v45, %v145_v55  ;;  %v1032_v62 = vadd.f32 %v150_v46, %v144_v56 }
  0xd3   :  { %v251_v11 = vpop.permute.xlu1 %250  ;;  %v249_v13 = vpop.permute.xlu0 %248 }
  0xd4   :  { %v155_v51 = vrot.slane %v1030_v61, 1  ;;  %v154_v52 = vrot.slane %v1032_v62, 1  ;;  %v253_v14 = vmul.f32 %v979_v23, %v251_v11  ;;  %v252_v17 = vmul.f32 %v979_v23, %v249_v13 }
  0xd5   :  { %v163_v18 = vrot.slane %v1032_v62, 7  ;;  %v164_v0 = vrot.slane %v1030_v61, 7  ;;  %v172_v12 = vrot.slane %v1032_v62, 2  ;;  %v173_v19 = vrot.slane %v1030_v61, 2 }
  0xd6   :  { %v1047_v24 = vadd.f32 %v253_v14, %v247_v3  ;;  %v1049_v27 = vadd.f32 %v252_v17, %v246_v6  ;;  %v157_v28 = vsel %vm156_vm12, %v154_v52, %v155_v51  ;;  %v158_v33 = vsel %vm156_vm12, %v155_v51, %v154_v52 }
  0xd7   :  { %v437_v34 = vpop.permute.xlu1 %436  ;;  %v435_v37 = vpop.permute.xlu0 %434  ;;  %v160_v39 = vmul.f32 %v984_v25, %v158_v33  ;;  %v161_v40 = vadd.f32 %v157_v28, %v1032_v62  ;;  %v166_v41 = vsel %vm165_vm13, %v163_v18, %v164_v0  ;;  %v167_v42 = vsel %vm165_vm13, %v164_v0, %v163_v18 }
  0xd8   :  { %v168_v49 = vmul.f32 %v1000_v32, %v167_v42  ;;  %v175_v50 = vsel %vm174_vm14, %v172_v12, %v173_v19  ;;  %v176_v53 = vsel %vm174_vm14, %v173_v19, %v172_v12  ;;  %v257_v54 = vrot.slane %v1047_v24, 1 }
  0xd9   :  { %v162_v48 = vadd.f32 %v160_v39, %v1030_v61  ;;  %v256_v55 = vrot.slane %v1049_v27, 1  ;;  %v178_v1 = vmul.f32 %v987_v26, %v176_v53  ;;  %v181_v56 = vrot.slane %v1032_v62, 6 }
  0xda   :  { %v170_v46 = vadd.f32 %v168_v49, %v161_v40  ;;  %v182_v4 = vrot.slane %v1030_v61, 6  ;;  %v190_v5 = vrot.slane %v1032_v62, 3  ;;  %v439_v2 = vmul.f32 %v971_v10, %v437_v34 }
  0xdb   :  { %v541_v45 = vpop.permute.xlu1 %540  ;;  %v1080_v20 = vpop.permute.xlu0 %538  ;;  %v171_v57 = vadd.f32 %v166_v41, %v162_v48  ;;  %v191_v3 = vrot.slane %v1030_v61, 3  ;;  %v199_v6 = vrot.slane %v1032_v62, 5  ;;  %v535_v52 = vmul.f32 %v948_v38, %v991_v29 }
  0xdc   :  { %v179_v7 = vadd.f32 %v175_v50, %v170_v46  ;;  %v184_v13 = vsel %vm183_vm15, %v181_v56, %v182_v4  ;;  %v185_v51 = vsel %vm183_vm15, %v182_v4, %v181_v56  ;;  %v200_v19 = vrot.slane %v1030_v61, 5 }
  0xdd   :  { %v180_v11 = vadd.f32 %v178_v1, %v171_v57  ;;  %v186_v14 = vmul.f32 %v1005_v35, %v185_v51  ;;  %v193_v62 = vsel %vm192_vm0, %v190_v5, %v191_v3  ;;  %v194_v12 = vsel %vm192_vm0, %v191_v3, %v190_v5 }
  0xde   :  { %v258_v29 = vsel %vm156_vm12, %v256_v55, %v257_v54  ;;  %v441_v28 = vadd.f32 %v439_v2, %v433_v47  ;;  %v438_v30 = vmul.f32 %v971_v10, %v435_v37  ;;  %v196_v34 = vmul.f32 %v997_v31, %v194_v12 }
  0xdf   :  { %v445_v17 = vpop.permute.xlu1 %444  ;;  %v443_v18 = vpop.permute.xlu0 %442  ;;  %v189_v0 = vadd.f32 %v184_v13, %v180_v11  ;;  %v188_v33 = vadd.f32 %v186_v14, %v179_v7  ;;  %v202_v39 = vsel %vm201_vm1, %v199_v6, %v200_v19  ;;  %v203_v40 = vsel %vm201_vm1, %v200_v19, %v199_v6 }
  0xe0   :  { %v259_v41 = vsel %vm156_vm12, %v257_v54, %v256_v55  ;;  %v262_v61 = vadd.f32 %v258_v29, %v1049_v27  ;;  %v447_v42 = vmul.f32 %v976_v22, %v445_v17  ;;  %v446_v47 = vmul.f32 %v976_v22, %v443_v18 }
  0xe1   :  { %v197_v15 = vadd.f32 %v193_v62, %v188_v33  ;;  %v198_v37 = vadd.f32 %v196_v34, %v189_v0  ;;  %v204_v50 = vmul.f32 %v1008_v36, %v203_v40  ;;  %v261_v53 = vmul.f32 %v984_v25, %v259_v41 }
  0xe2   :  { %v264_v1 = vrot.slane %v1049_v27, 7  ;;  %v265_v56 = vrot.slane %v1047_v24, 7  ;;  %v440_v46 = vadd.f32 %v438_v30, %v432_v59  ;;  %v543_v54 = vmul.f32 %v971_v10, %v541_v45 }
  0xe3   :  { %v549_v48 = vpop.permute.xlu1 %548  ;;  %v547_v49 = vpop.permute.xlu0 %546  ;;  %v1121_v55 = vadd.f32 %v202_v39, %v198_v37  ;;  %v272_v57 = vrot.slane %v1049_v27, 2  ;;  %v1124_v4 = vadd.f32 %v204_v50, %v197_v15  ;;  %v263_v5 = vadd.f32 %v261_v53, %v1047_v24 }
  0xe4   :  { %v266_v2 = vsel %vm165_vm13, %v264_v1, %v265_v56  ;;  %v267_v3 = vsel %vm165_vm13, %v265_v56, %v264_v1  ;;  %v449_v6 = vadd.f32 %v447_v42, %v441_v28  ;;  %v448_v7 = vadd.f32 %v446_v47, %v440_v46 }
  0xe5   :  { %v268_v59 = vmul.f32 %v1000_v32, %v267_v3  ;;  %v273_v45 = vrot.slane %v1047_v24, 2  ;;  %v271_v51 = vadd.f32 %v266_v2, %v263_v5  ;;  %v280_v14 = vrot.slane %v1049_v27, 6 }
  0xe6   :  { %v281_v62 = vrot.slane %v1047_v24, 6  ;;  %v288_v17 = vrot.slane %v1049_v27, 3  ;;  %v289_v33 = vrot.slane %v1047_v24, 3  ;;  %v528_v34 = vadd.f32 %v1066_v44, %v1026_v58 }
  0xe7   :  { %v453_v11 = vpop.permute.xlu1 %452  ;;  %v451_v13 = vpop.permute.xlu0 %450  ;;  %v270_v12 = vadd.f32 %v268_v59, %v262_v61  ;;  %v274_v19 = vsel %vm174_vm14, %v272_v57, %v273_v45  ;;  %v275_v29 = vsel %vm174_vm14, %v273_v45, %v272_v57  ;;  %v537_v61 = vadd.f32 %v535_v52, %v1062_v43 }
  0xe8   :  { %v455_v18 = vmul.f32 %v979_v23, %v453_v11  ;;  %v454_v0 = vmul.f32 %v979_v23, %v451_v13  ;;  %v282_v28 = vsel %vm183_vm15, %v280_v14, %v281_v62  ;;  %v283_v30 = vsel %vm183_vm15, %v281_v62, %v280_v14 }
  0xe9   :  { %v278_v41 = vadd.f32 %v274_v19, %v270_v12  ;;  %v551_v42 = vmul.f32 %v976_v22, %v549_v48  ;;  %v290_v37 = vsel %vm192_vm0, %v288_v17, %v289_v33  ;;  %v291_v50 = vsel %vm192_vm0, %v289_v33, %v288_v17 }
  0xea   :  { %v1149_v39 = vadd.f32 %v455_v18, %v449_v6  ;;  %v1151_v40 = vadd.f32 %v454_v0, %v448_v7  ;;  %v542_v58 = vmul.f32 %v971_v10, %v1080_v20  ;;  %v277_v53 = vmul.f32 %v987_v26, %v275_v29 }
  0xeb   :  { %v557_v47 = vpop.permute.xlu1 %556  ;;  %v555_v15 = vpop.permute.xlu0 %554  ;;  %v284_v1 = vmul.f32 %v1005_v35, %v283_v30  ;;  %v536_v43 = vadd.f32 %v1095_v60, %v528_v34  ;;  %v545_v52 = vadd.f32 %v543_v54, %v537_v61  ;;  %v296_v56 = vrot.slane %v1049_v27, 5 }
  0xec   :  { %v459_v44 = vrot.slane %v1149_v39, 1  ;;  %v458_v48 = vrot.slane %v1151_v40, 1  ;;  %v550_v46 = vmul.f32 %v976_v22, %v547_v49  ;;  %v559_v57 = vmul.f32 %v979_v23, %v557_v47 }
  0xed   :  { %v279_v5 = vadd.f32 %v277_v53, %v271_v51  ;;  %v286_v2 = vadd.f32 %v284_v1, %v278_v41  ;;  %v553_v20 = vadd.f32 %v551_v42, %v545_v52  ;;  %v297_v54 = vrot.slane %v1047_v24, 5 }
  0xee   :  { %v460_v3 = vsel %vm156_vm12, %v458_v48, %v459_v44  ;;  %v461_v6 = vsel %vm156_vm12, %v459_v44, %v458_v48  ;;  %v544_v59 = vadd.f32 %v542_v58, %v536_v43  ;;  %v558_v49 = vmul.f32 %v979_v23, %v555_v15 }
  0xef   :  { %v309_v7 = vpop.permute.xlu1 %308  ;;  %v307_v60 = vpop.permute.xlu0 %306  ;;  %v464_v27 = vadd.f32 %v460_v3, %v1151_v40  ;;  %v1177_v11 = vadd.f32 %v559_v57, %v553_v20  ;;  %v287_v13 = vadd.f32 %v282_v28, %v279_v5  ;;  %v294_v51 = vadd.f32 %v290_v37, %v286_v2 }
  0xf0   :  { %v311_v45 = vmul.f32 %v924_v16, %v309_v7  ;;  %v298_v14 = vsel %vm201_vm1, %v296_v56, %v297_v54  ;;  %v552_v62 = vadd.f32 %v550_v46, %v544_v59  ;;  %v467_v17 = vrot.slane %v1149_v39, 7 }
  0xf1   :  { %v310_v18 = vmul.f32 %v924_v16, %v307_v60  ;;  %v475_v24 = vrot.slane %v1149_v39, 2  ;;  %v483_v0 = vrot.slane %v1149_v39, 6  ;;  %v466_v12 = vrot.slane %v1151_v40, 7 }
  0xf2   :  { %v293_v30 = vmul.f32 %v997_v31, %v291_v50  ;;  %v474_v28 = vrot.slane %v1151_v40, 2  ;;  %v482_v33 = vrot.slane %v1151_v40, 6  ;;  %v313_v34 = vadd.f32 %v311_v45, %v893_v8 }
  0xf3   :  { %v317_v19 = vpop.permute.xlu1 %316  ;;  %v315_v29 = vpop.permute.xlu0 %314  ;;  %v563_v16 = vrot.slane %v1177_v11, 1  ;;  %v1192_v61 = vadd.f32 %v558_v49, %v552_v62  ;;  %v299_v47 = vsel %vm201_vm1, %v297_v54, %v296_v56  ;;  %v312_v15 = vadd.f32 %v310_v18, %v897_v9 }
  0xf4   :  { %v319_v41 = vmul.f32 %v934_v21, %v317_v19  ;;  %v295_v42 = vadd.f32 %v293_v30, %v287_v13  ;;  %v318_v50 = vmul.f32 %v934_v21, %v315_v29  ;;  %v300_v58 = vmul.f32 %v1008_v36, %v299_v47 }
  0xf5   :  { %v463_v1 = vmul.f32 %v984_v25, %v461_v6  ;;  %v468_v43 = vsel %vm165_vm13, %v466_v12, %v467_v17  ;;  %v469_v52 = vsel %vm165_vm13, %v467_v17, %v466_v12  ;;  %v476_v5 = vsel %vm174_vm14, %v474_v28, %v475_v24 }
  0xf6   :  { %v321_v37 = vadd.f32 %v319_v41, %v313_v34  ;;  %v1199_v8 = vadd.f32 %v298_v14, %v295_v42  ;;  %v1208_v56 = vadd.f32 %v300_v58, %v294_v51  ;;  %v470_v21 = vmul.f32 %v1000_v32, %v469_v52 }
  0xf7   :  { %v325_v44 = vpop.permute.xlu1 %324  ;;  %v323_v53 = vpop.permute.xlu0 %322  ;;  %v465_v57 = vadd.f32 %v463_v1, %v1149_v39  ;;  %v477_v2 = vsel %vm174_vm14, %v475_v24, %v474_v28  ;;  %v562_v20 = vrot.slane %v1192_v61, 1  ;;  %v320_v3 = vadd.f32 %v318_v50, %v312_v15 }
  0xf8   :  { %v327_v48 = vmul.f32 %v948_v38, %v325_v44  ;;  %v326_v9 = vmul.f32 %v948_v38, %v323_v53  ;;  %v1213_v46 = vmul.f32 %v1199_v8, %v1121_v55  ;;  %v1223_v38 = vmul.f32 %v1208_v56, %v1124_v4 }
  0xf9   :  { %v472_v6 = vadd.f32 %v470_v21, %v464_v27  ;;  %v473_v59 = vadd.f32 %v468_v43, %v465_v57  ;;  %v479_v49 = vmul.f32 %v987_v26, %v477_v2  ;;  %v484_v45 = vsel %vm183_vm15, %v482_v33, %v483_v0 }
  0xfa   :  { %v329_v7 = vadd.f32 %v327_v48, %v321_v37  ;;  %v328_v13 = vadd.f32 %v326_v9, %v320_v3  ;;  %v485_v18 = vsel %vm183_vm15, %v483_v0, %v482_v33  ;;  %v490_v27 = vrot.slane %v1151_v40, 3 }
  0xfb   :  { %v333_v60 = vpop.permute.xlu1 %332  ;;  %v331_v54 = vpop.permute.xlu0 %330  ;;  %v480_v62 = vadd.f32 %v476_v5, %v472_v6  ;;  %v481_v17 = vadd.f32 %v479_v49, %v473_v59  ;;  %v491_v24 = vrot.slane %v1149_v39, 3  ;;  %v486_v29 = vmul.f32 %v1005_v35, %v485_v18 }
  0xfc   :  { %v335_v51 = vmul.f32 %v971_v10, %v333_v60  ;;  %v334_v14 = vmul.f32 %v971_v10, %v331_v54  ;;  %v498_v30 = vrot.slane %v1151_v40, 5  ;;  %v499_v0 = vrot.slane %v1149_v39, 5 }
  0xfd   :  { %v489_v41 = vadd.f32 %v484_v45, %v481_v17  ;;  %v492_v10 = vsel %vm192_vm0, %v490_v27, %v491_v24  ;;  %v493_v42 = vsel %vm192_vm0, %v491_v24, %v490_v27  ;;  %v488_v15 = vadd.f32 %v486_v29, %v480_v62 }
  0xfe   :  { %v337_v12 = vadd.f32 %v335_v51, %v329_v7  ;;  %v336_v19 = vadd.f32 %v334_v14, %v328_v13  ;;  %v495_v37 = vmul.f32 %v997_v31, %v493_v42  ;;  %v500_v40 = vsel %vm201_vm1, %v498_v30, %v499_v0 }
  0xff   :  { %v341_v28 = vpop.permute.xlu1 %340  ;;  %v339_v34 = vpop.permute.xlu0 %338  ;;  %v501_v50 = vsel %vm201_vm1, %v499_v0, %v498_v30  ;;  %v506_v58 = vmul.f32 %v1124_v4, %v1124_v4  ;;  %v507_v44 = vmul.f32 %v1121_v55, %v1121_v55  ;;  %v571_v39 = vrot.slane %v1177_v11, 7 }
 0x100   :  { %v343_v33 = vmul.f32 %v976_v22, %v341_v28  ;;  %v342_v47 = vmul.f32 %v976_v22, %v339_v34  ;;  %v570_v53 = vrot.slane %v1192_v61, 7  ;;  %v496_v22 = vadd.f32 %v492_v10, %v488_v15 }
 0x101   :  { %v497_v1 = vadd.f32 %v495_v37, %v489_v41  ;;  %v565_v43 = vsel %vm156_vm12, %v563_v16, %v562_v20  ;;  %v502_v4 = vmul.f32 %v1008_v36, %v501_v50  ;;  %v1263_v2 = vmul.f32 0.020408163, %v507_v44 }
 0x102   :  { %v345_v52 = vadd.f32 %v343_v33, %v337_v12  ;;  %v344_v48 = vadd.f32 %v342_v47, %v336_v19  ;;  %v1267_v6 = vmul.f32 0.020408163, %v506_v58  ;;  %v567_v59 = vmul.f32 %v984_v25, %v565_v43 }
 0x103   :  { %v349_v9 = vpop.permute.xlu1 %348  ;;  %v347_v21 = vpop.permute.xlu0 %346  ;;  %v1261_v5 = vadd.f32 %v500_v40, %v497_v1  ;;  %v1265_v3 = vadd.f32 %v502_v4, %v496_v22  ;;  %v573_v45 = vsel %vm165_vm13, %v571_v39, %v570_v53  ;;  %v579_v17 = vrot.slane %v1177_v11, 2 }
 0x104   :  { %v351_v57 = vmul.f32 %v979_v23, %v349_v9  ;;  %v350_v55 = vmul.f32 %v979_v23, %v347_v21  ;;  %v564_v23 = vsel %vm156_vm12, %v562_v20, %v563_v16  ;;  %v578_v18 = vrot.slane %v1192_v61, 2 }
 0x105   :  { %v511_v54 = vsub.f32 %v1261_v5, %v1263_v2  ;;  %v510_v49 = vsub.f32 %v1265_v3, %v1267_v6  ;;  %v568_v16 = vadd.f32 %v564_v23, %v1192_v61  ;;  %v569_v27 = vadd.f32 %v567_v59, %v1177_v11 }
 0x106   :  { %v1269_v7 = vadd.f32 %v351_v57, %v345_v52  ;;  %v1271_v60 = vadd.f32 %v350_v55, %v344_v48  ;;  %v574_v24 = vmul.f32 %v1000_v32, %v573_v45  ;;  %v587_v12 = vrot.slane %v1177_v11, 6 }
 0x107   :  { %v586_v19 = vrot.slane %v1192_v61, 6  ;;  %v572_v10 = vsel %vm165_vm13, %v570_v53, %v571_v39  ;;  %v581_v42 = vsel %vm174_vm14, %v579_v17, %v578_v18  ;;  %v580_v58 = vsel %vm174_vm14, %v578_v18, %v579_v17 }
 0x108   :  { %v354_v13 = vrot.slane %v1271_v60, 1  ;;  %v355_v51 = vrot.slane %v1269_v7, 1  ;;  %v362_v14 = vrot.slane %v1271_v60, 7  ;;  %v363_v62 = vrot.slane %v1269_v7, 7 }
 0x109   :  { %v370_v34 = vrot.slane %v1271_v60, 2  ;;  %v371_v41 = vrot.slane %v1269_v7, 2  ;;  %v378_v0 = vrot.slane %v1271_v60, 6  ;;  %v576_v33 = vadd.f32 %v574_v24, %v568_v16 }
 0x10a   :  { %v357_v20 = vsel %vm156_vm12, %v355_v51, %v354_v13  ;;  %v356_v29 = vsel %vm156_vm12, %v354_v13, %v355_v51  ;;  %v365_v28 = vsel %vm165_vm13, %v363_v62, %v362_v14  ;;  %v577_v47 = vadd.f32 %v572_v10, %v569_v27 }
 0x10b   :  { %v359_v30 = vmul.f32 %v984_v25, %v357_v20  ;;  %v360_v15 = vadd.f32 %v356_v29, %v1271_v60  ;;  %v366_v25 = vmul.f32 %v1000_v32, %v365_v28  ;;  %v379_v37 = vrot.slane %v1269_v7, 6 }
 0x10c   :  { %v589_v40 = vsel %vm183_vm15, %v587_v12, %v586_v19  ;;  %v583_v44 = vmul.f32 %v987_v26, %v581_v42  ;;  %v364_v39 = vsel %vm165_vm13, %v362_v14, %v363_v62  ;;  %v372_v53 = vsel %vm174_vm14, %v370_v34, %v371_v41 }
 0x10d   :  { %v361_v50 = vadd.f32 %v359_v30, %v1269_v7  ;;  %v373_v32 = vsel %vm174_vm14, %v371_v41, %v370_v34  ;;  %v588_v22 = vsel %vm183_vm15, %v586_v19, %v587_v12  ;;  %v584_v1 = vadd.f32 %v580_v58, %v576_v33 }
 0x10e   :  { %v585_v43 = vadd.f32 %v583_v44, %v577_v47  ;;  %v590_v52 = vmul.f32 %v1005_v35, %v589_v40  ;;  %v594_v48 = vrot.slane %v1192_v61, 3  ;;  %v368_v9 = vadd.f32 %v366_v25, %v360_v15 }
 0x10f   :  { %v381_v21 = vsel %vm183_vm15, %v379_v37, %v378_v0  ;;  %v595_v4 = vrot.slane %v1177_v11, 3  ;;  %v602_v57 = vrot.slane %v1192_v61, 5  ;;  %v369_v55 = vadd.f32 %v364_v39, %v361_v50 }
 0x110   :  { %v592_v59 = vadd.f32 %v590_v52, %v584_v1  ;;  %v593_v23 = vadd.f32 %v588_v22, %v585_v43  ;;  %v603_v45 = vrot.slane %v1177_v11, 5  ;;  %v386_v13 = vrot.slane %v1271_v60, 3 }
 0x111   :  { %v596_v51 = vsel %vm192_vm0, %v594_v48, %v595_v4  ;;  %v597_v14 = vsel %vm192_vm0, %v595_v4, %v594_v48  ;;  %v610_v62 = vmul.f32 %v1208_v56, %v1208_v56  ;;  %v375_v17 = vmul.f32 %v987_v26, %v373_v32 }
 0x112   :  { %v599_v61 = vmul.f32 %v997_v31, %v597_v14  ;;  %v600_v18 = vadd.f32 %v596_v51, %v592_v59  ;;  %v605_v16 = vsel %vm201_vm1, %v603_v45, %v602_v57  ;;  %v376_v11 = vadd.f32 %v372_v53, %v368_v9 }
 0x113   :  { %v387_v20 = vrot.slane %v1269_v7, 3  ;;  %v606_v27 = vmul.f32 %v1008_v36, %v605_v16  ;;  %v611_v24 = vmul.f32 %v1199_v8, %v1199_v8  ;;  %v377_v12 = vadd.f32 %v375_v17, %v369_v55 }
 0x114   :  { %v601_v19 = vadd.f32 %v599_v61, %v593_v23  ;;  %v382_v56 = vmul.f32 %v1005_v35, %v381_v21  ;;  %v604_v26 = vsel %vm201_vm1, %v602_v57, %v603_v45  ;;  %v612_v30 = vmul.f32 0.020408163, %v610_v62 }
 0x115   :  { %v608_v29 = vadd.f32 %v606_v27, %v600_v18  ;;  %v394_v28 = vrot.slane %v1271_v60, 5  ;;  %v395_v34 = vrot.slane %v1269_v7, 5  ;;  %v613_v10 = vmul.f32 0.020408163, %v611_v24 }
 0x116   :  { %v609_v41 = vadd.f32 %v604_v26, %v601_v19  ;;  %v380_v42 = vsel %vm183_vm15, %v378_v0, %v379_v37  ;;  %v384_v33 = vadd.f32 %v382_v56, %v376_v11  ;;  %v389_v8 = vsel %vm192_vm0, %v387_v20, %v386_v13 }
 0x117   :  { %v614_v47 = vsub.f32 %v608_v29, %v612_v30  ;;  %v385_v35 = vadd.f32 %v380_v42, %v377_v12  ;;  %v388_v60 = vsel %vm192_vm0, %v386_v13, %v387_v20  ;;  %v391_v7 = vmul.f32 %v997_v31, %v389_v8 }
 0x118   :  { %v615_v15 = vsub.f32 %v609_v41, %v613_v10  ;;  %v397_v40 = vsel %vm201_vm1, %v395_v34, %v394_v28  ;;  %v392_v37 = vadd.f32 %v388_v60, %v384_v33  ;;  %v396_v3 = vsel %vm201_vm1, %v394_v28, %v395_v34 }
 0x119   :  { %v618_v25 = vmul.f32 %v614_v47, %v510_v49  ;;  %v393_v58 = vadd.f32 %v391_v7, %v385_v35  ;;  %v398_v39 = vmul.f32 %v1008_v36, %v397_v40  ;;  %v404_v49 = vmul.f32 0.020408163, %v1223_v38 }
 0x11a   :  { %v619_v0 = vmul.f32 %v615_v15, %v511_v54  ;;  %v405_v53 = vmul.f32 0.020408163, %v1213_v46 }
 0x11b   :  { %v620_v50 = vadd.f32 1e-05, %v618_v25  ;;  %v400_v6 = vadd.f32 %v398_v39, %v392_v37  ;;  %v401_v31 = vadd.f32 %v396_v3, %v393_v58 }
 0x11c   :  { %v621_v44 = vadd.f32 1e-05, %v619_v0 }
 0x11d   :  { %668 = vrcp.f32 %v620_v50  ;;  %v406_v32 = vsub.f32 %v400_v6, %v404_v49  ;;  %v407_v5 = vsub.f32 %v401_v31, %v405_v53 }
 0x11e   :  { %670 = vrcp.f32 %v621_v44 }
 0x11f   :  { %v616_v2 = vmul.f32 %v406_v32, %v406_v32  ;;  %v617_v54 = vmul.f32 %v407_v5, %v407_v5 }
 0x12a   :  { %v669_v22 = vpop.eup %668 }
 0x12b   :  { %v671_v1 = vpop.eup %670  ;;  %v623_v43 = vmul.f32 %v669_v22, %v616_v2 }
 0x12c   :  { %v625_v36 = vmul.f32 %v671_v1, %v617_v54 }
 0x12e   :  { %v626_v52 = vadd.f32 %v625_v36, %v623_v43 }
 0x130   :  { %627 = vst [vmem:[#allocation7] sm:$0xff] %v626_v52 }
 0x131   :  { %723 = shalt.err (!%p720_p0)
}
 0x132   :  { %637 = dma.vmem_to_hbm [thread:$0]  %s635_s26, 128, %s1378_s2, [#allocation4]  }
 0x133   :  { %736 = dma.done.wait [#allocation4], 128  }
 0x134   :  { %737 = vsyncadd [#allocation4], 4294967168 }
 0x135   :  { %641 = vsyncpa [#allocation3], 1 }
 0x136   :  { %642 = vsyncpa [#allocation6], 1 }
 0x137   :  { %643 = vsyncpa [#allocation4], 1 }

</bundles_post_ra>
